<compile_context>
chip_gen: v5e
topology: v5e:2x2
jax: 0.10.0
libtpu: 0.0.40
codegen_flags: <defaults>
</compile_context>

<pallas_src>
import jax
import jax.numpy as jnp
from jax.experimental import pallas as pl
from jax.experimental.pallas import tpu as pltpu


# ----------------------------- in-kernel math -------------------------------
def _gelu_tanh(x):
    # tanh-approximate GELU: 0.5*x*(1 + tanh(sqrt(2/pi)*(x + 0.044715*x^3))).
    # tanh lowers to the EUP (a separate, otherwise-idle slot), removing the
    # erf polynomial + full-precision divide from the binding VALU slot.
    # Max abs deviation from exact GELU ~1e-3, far inside test tolerance.
    c = 0.7978845608028654  # sqrt(2/pi)
    return 0.5 * x * (1.0 + jnp.tanh(c * (x + 0.044715 * x * x * x)))


# --------------------------------- kernel ------------------------------------
def _make_ffn_kernel(epi_dtype):
    """Build the fused FFN kernel. epi_dtype = dtype of the bias+GELU epilogue
    (bf16 on v6e/v7x where VPU/EUP are bf16-capable, f32 on v5e)."""

    def kernel(x_ref, w1_ref, b1_ref, w2_ref, b2_ref, o_ref):
        # x_ref block: (1, C, T) -- channels on sublanes, pixels on lanes.
        # Input stays f32 in HBM; cast to bf16 in-register (no extra HBM pass).
        x = x_ref[0].astype(jnp.bfloat16)                           # (C, T)
        # Conv1x1 (dim -> hidden): (Hd, C) @ (C, T) -> (Hd, T), f32 MXU acc.
        h = jax.lax.dot_general(w1_ref[...], x, (((1,), (0,)), ((), ())),
                                preferred_element_type=jnp.float32)
        h = _gelu_tanh(h.astype(epi_dtype) + b1_ref[...])           # (Hd,1) bcast
        h = h.astype(jnp.bfloat16)                                  # no-op if bf16
        # Conv1x1 (hidden -> dim): (C, Hd) @ (Hd, T) -> (C, T), f32 MXU acc.
        y = jax.lax.dot_general(w2_ref[...], h, (((1,), (0,)), ((), ())),
                                preferred_element_type=jnp.float32)
        y = _gelu_tanh(y.astype(epi_dtype) + b2_ref[...])
        # TODO(synk): nn.Dropout(p=0.0) is the identity; nothing to lower.
        o_ref[0] = y.astype(o_ref.dtype)

    return kernel


# --------------------------- pallas_call wrapper ------------------------------
def _device_kind():
    try:
        return jax.devices()[0].device_kind.lower()
    except Exception:
        return ""


def _pick_tile(hw, cap):
    # Largest multiple of 128 that divides hw (<= cap); else the full extent
    # (legal because the block dim then equals the array dim; lane-masked
    # stores only hit for shapes where HW % 128 != 0).
    best = None
    t = 128
    while t <= min(hw, cap):
        if hw % t == 0:
            best = t
        t += 128
    return best if best is not None else hw


def feed_forward(x_nchw, params, *, max_tile=32768):
    """FeedForward forward pass.  x_nchw: (B, dim, H, W) f32 -> (B, dim, H, W) f32."""
    B, C, H, W = x_nchw.shape
    HW = H * W
    Hd = params["w1"].shape[0]

    kind = _device_kind()
    # v5e: no bf16 VPU/EUP -> keep the GELU epilogue in f32 there.
    epi_dtype = jnp.float32 if "v5" in kind else jnp.bfloat16
    # Physical VMEM per TensorCore: 64 MiB on v7x, 128 MiB on v5e/v6e.
    if "v7" in kind:
        vmem_cap = 64 * 1024 * 1024
    elif "v5" in kind or "v6" in kind:
        vmem_cap = 128 * 1024 * 1024
    else:
        vmem_cap = 64 * 1024 * 1024   # unknown backend: be conservative

    # Tile size from a VMEM budget: double-buffered f32 in/out blocks plus
    # f32/bf16 intermediates (h, its bf16 copy, y, GELU temps) estimated at
    # ~(32*C + 24*Hd) bytes per pixel column; target half of physical VMEM.
    bytes_per_col = 32 * C + 24 * Hd
    t_cap = max(128, ((vmem_cap // 2) // bytes_per_col) // 128 * 128)
    t_cap = min(t_cap, max_tile)
    if B == 1 and HW >= 256:
        # Megacore (v7x): keep >= 2 pixel-axis steps so both TCs get work.
        t_cap = max(128, min(t_cap, (HW // 2) // 128 * 128))
    t = _pick_tile(HW, t_cap)

    x = x_nchw.reshape(B, C, HW)                                    # f32, zero-copy
    w1 = params["w1"].astype(jnp.bfloat16)                          # (Hd, C)
    w2 = params["w2"].astype(jnp.bfloat16)                          # (C, Hd)
    b1 = params["b1"].reshape(Hd, 1).astype(epi_dtype)
    b2 = params["b2"].reshape(C, 1).astype(epi_dtype)

    vmem_limit = int(min(vmem_cap * 3 // 4, 100 * 1024 * 1024))

    out = pl.pallas_call(
        _make_ffn_kernel(epi_dtype),
        out_shape=jax.ShapeDtypeStruct((B, C, HW), jnp.float32),
        grid=(B, HW // t),
        in_specs=[
            pl.BlockSpec((1, C, t), lambda b, j: (b, 0, j)),        # activation tile
            pl.BlockSpec((Hd, C), lambda b, j: (0, 0)),             # weights pinned
            pl.BlockSpec((Hd, 1), lambda b, j: (0, 0)),
            pl.BlockSpec((C, Hd), lambda b, j: (0, 0)),
            pl.BlockSpec((C, 1), lambda b, j: (0, 0)),
        ],
        out_specs=pl.BlockSpec((1, C, t), lambda b, j: (b, 0, j)),
        compiler_params=pltpu.CompilerParams(
            dimension_semantics=("parallel", "parallel"),
            vmem_limit_bytes=vmem_limit,
        ),
    )(x, w1, b1, w2, b2)
    return out.reshape(B, C, H, W)


# ------------------------------ param init -----------------------------------
def init_params(key, dim, hidden_dim):
    k1, k2, k3, k4 = jax.random.split(key, 4)

    def nrm(k, shape, scale):
        return jax.random.normal(k, shape, jnp.float32) * scale

    return {
        # Conv2d 1x1 weights stored as (out, in) matmul matrices.
        "w1": nrm(k1, (hidden_dim, dim), 0.1), "b1": nrm(k2, (hidden_dim,), 0.1),
        "w2": nrm(k3, (dim, hidden_dim), 0.1), "b2": nrm(k4, (dim,), 0.1),
    }


# ------------------------------ pure-JAX ref ----------------------------------
def _reference(x_nchw, params):
    B, C, H, W = x_nchw.shape
    x = x_nchw.reshape(B, C, H * W)
    h = jnp.einsum("oc,bcp->bop", params["w1"], x) + params["b1"][None, :, None]
    h = jax.nn.gelu(h, approximate=False)
    y = jnp.einsum("oc,bcp->bop", params["w2"], h) + params["b2"][None, :, None]
    y = jax.nn.gelu(y, approximate=False)
    return y.reshape(B, C, H, W)


if __name__ == "__main__":
    key = jax.random.PRNGKey(0)
    kx, kp = jax.random.split(key)

    B, dim, H, W = 2, 4, 16, 16
    hidden_dim = 16
    x = jax.random.normal(kx, (B, dim, H, W), jnp.float32)
    params = init_params(kp, dim, hidden_dim)

    out = jax.jit(feed_forward)(x, params)
    out = jax.block_until_ready(out)

    assert out.shape == (B, dim, H, W) and out.dtype == jnp.float32
    assert bool(jnp.all(jnp.isfinite(out)))

    ref = _reference(x, params)
    # bf16 MXU operands + tanh-approx GELU vs exact-erf f32 reference -> loose tol.
    assert bool(jnp.allclose(out, ref, rtol=5e-2, atol=5e-2))

    print("KERNEL_OK")
</pallas_src>

<mosaic_0001>
module attributes {stable_mosaic.version = 11 : i64} {
  func.func @kernel(%arg0: i32, %arg1: i32, %arg2: memref<1x4x256xf32, #tpu.memory_space<vmem>>, %arg3: memref<16x4xbf16, #tpu.memory_space<vmem>>, %arg4: memref<16x1xbf16, #tpu.memory_space<vmem>>, %arg5: memref<4x16xbf16, #tpu.memory_space<vmem>>, %arg6: memref<4x1xbf16, #tpu.memory_space<vmem>>, %arg7: memref<1x4x256xf32, #tpu.memory_space<vmem>>) attributes {dimension_semantics = [#tpu.dimension_semantics<parallel>, #tpu.dimension_semantics<parallel>], iteration_bounds = array<i64: 2, 1>, scalar_prefetch = 0 : i64, scratch_operands = 0 : i64, tpu.core_type = #tpu.core_type<tc>, window_params = [{transform_indices = @transform_0, window_bounds = array<i64: 1, 4, 256>}, {pipeline_mode = #tpu.pipeline_mode<synchronous>, transform_indices = @transform_1, window_bounds = array<i64: 16, 4>}, {pipeline_mode = #tpu.pipeline_mode<synchronous>, transform_indices = @transform_2, window_bounds = array<i64: 16, 1>}, {pipeline_mode = #tpu.pipeline_mode<synchronous>, transform_indices = @transform_3, window_bounds = array<i64: 4, 16>}, {pipeline_mode = #tpu.pipeline_mode<synchronous>, transform_indices = @transform_4, window_bounds = array<i64: 4, 1>}, {transform_indices = @transform_5, window_bounds = array<i64: 1, 4, 256>}]} {
    %c0 = arith.constant 0 : index
    %c0_0 = arith.constant 0 : index
    %c0_1 = arith.constant 0 : index
    %0 = vector.load %arg2[%c0, %c0_0, %c0_1] : memref<1x4x256xf32, #tpu.memory_space<vmem>>, vector<1x4x256xf32>
    %1 = vector.shape_cast %0 : vector<1x4x256xf32> to vector<4x256xf32>
    %2 = arith.truncf %1 : vector<4x256xf32> to vector<4x256xbf16>
    %c0_2 = arith.constant 0 : index
    %c0_3 = arith.constant 0 : index
    %3 = vector.load %arg3[%c0_2, %c0_3] : memref<16x4xbf16, #tpu.memory_space<vmem>>, vector<16x4xbf16>
    %cst = arith.constant dense<0.000000e+00> : vector<16x256xf32>
    %4 = tpu.matmul %3, %2, %cst {dimension_numbers = #tpu.dot_dimension_numbers<[1], [0], [0], [1], [0, 0, 1, 1], [], []>} : vector<16x4xbf16>, vector<4x256xbf16>, vector<16x256xf32> -> vector<16x256xf32>
    %5 = arith.truncf %4 : vector<16x256xf32> to vector<16x256xbf16>
    %c0_4 = arith.constant 0 : index
    %c0_5 = arith.constant 0 : index
    %6 = vector.load %arg4[%c0_4, %c0_5] : memref<16x1xbf16, #tpu.memory_space<vmem>>, vector<16x1xbf16>
    %7 = vector.broadcast %6 : vector<16x1xbf16> to vector<16x256xbf16>
    %8 = arith.addf %5, %7 : vector<16x256xbf16>
    %cst_6 = arith.constant 5.000000e-01 : bf16
    %9 = vector.broadcast %cst_6 : bf16 to vector<16x256xbf16>
    %10 = arith.mulf %9, %8 : vector<16x256xbf16>
    %cst_7 = arith.constant 4.467770e-02 : bf16
    %11 = vector.broadcast %cst_7 : bf16 to vector<16x256xbf16>
    %12 = arith.mulf %11, %8 : vector<16x256xbf16>
    %13 = arith.mulf %12, %8 : vector<16x256xbf16>
    %14 = arith.mulf %13, %8 : vector<16x256xbf16>
    %15 = arith.addf %8, %14 : vector<16x256xbf16>
    %cst_8 = arith.constant 7.968750e-01 : bf16
    %16 = vector.broadcast %cst_8 : bf16 to vector<16x256xbf16>
    %17 = arith.mulf %16, %15 : vector<16x256xbf16>
    %18 = math.tanh %17 : vector<16x256xbf16>
    %cst_9 = arith.constant 1.000000e+00 : bf16
    %19 = vector.broadcast %cst_9 : bf16 to vector<16x256xbf16>
    %20 = arith.addf %19, %18 : vector<16x256xbf16>
    %21 = arith.mulf %10, %20 : vector<16x256xbf16>
    %c0_10 = arith.constant 0 : index
    %c0_11 = arith.constant 0 : index
    %22 = vector.load %arg5[%c0_10, %c0_11] : memref<4x16xbf16, #tpu.memory_space<vmem>>, vector<4x16xbf16>
    %cst_12 = arith.constant dense<0.000000e+00> : vector<4x256xf32>
    %23 = tpu.matmul %22, %21, %cst_12 {dimension_numbers = #tpu.dot_dimension_numbers<[1], [0], [0], [1], [0, 0, 1, 1], [], []>} : vector<4x16xbf16>, vector<16x256xbf16>, vector<4x256xf32> -> vector<4x256xf32>
    %24 = arith.truncf %23 : vector<4x256xf32> to vector<4x256xbf16>
    %c0_13 = arith.constant 0 : index
    %c0_14 = arith.constant 0 : index
    %25 = vector.load %arg6[%c0_13, %c0_14] : memref<4x1xbf16, #tpu.memory_space<vmem>>, vector<4x1xbf16>
    %26 = vector.broadcast %25 : vector<4x1xbf16> to vector<4x256xbf16>
    %27 = arith.addf %24, %26 : vector<4x256xbf16>
    %cst_15 = arith.constant 5.000000e-01 : bf16
    %28 = vector.broadcast %cst_15 : bf16 to vector<4x256xbf16>
    %29 = arith.mulf %28, %27 : vector<4x256xbf16>
    %cst_16 = arith.constant 4.467770e-02 : bf16
    %30 = vector.broadcast %cst_16 : bf16 to vector<4x256xbf16>
    %31 = arith.mulf %30, %27 : vector<4x256xbf16>
    %32 = arith.mulf %31, %27 : vector<4x256xbf16>
    %33 = arith.mulf %32, %27 : vector<4x256xbf16>
    %34 = arith.addf %27, %33 : vector<4x256xbf16>
    %cst_17 = arith.constant 7.968750e-01 : bf16
    %35 = vector.broadcast %cst_17 : bf16 to vector<4x256xbf16>
    %36 = arith.mulf %35, %34 : vector<4x256xbf16>
    %37 = math.tanh %36 : vector<4x256xbf16>
    %cst_18 = arith.constant 1.000000e+00 : bf16
    %38 = vector.broadcast %cst_18 : bf16 to vector<4x256xbf16>
    %39 = arith.addf %38, %37 : vector<4x256xbf16>
    %40 = arith.mulf %29, %39 : vector<4x256xbf16>
    %41 = arith.extf %40 : vector<4x256xbf16> to vector<4x256xf32>
    %c0_19 = arith.constant 0 : index
    %c0_20 = arith.constant 0 : index
    %c0_21 = arith.constant 0 : index
    %42 = vector.load %arg7[%c0_19, %c0_20, %c0_21] : memref<1x4x256xf32, #tpu.memory_space<vmem>>, vector<1x4x256xf32>
    %43 = vector.shape_cast %42 : vector<1x4x256xf32> to vector<4x256xf32>
    %44 = vector.shape_cast %41 : vector<4x256xf32> to vector<1x4x256xf32>
    tpu.vector_store %arg7[%c0_19, %c0_20, %c0_21], %44 {strides = array<i32>} : memref<1x4x256xf32, #tpu.memory_space<vmem>>, vector<1x4x256xf32>,
    return
  }
  func.func @transform_0(%arg0: i32, %arg1: i32) -> (i32, i32, i32) {
    %c0_i32 = arith.constant 0 : i32
    %c0_i32_0 = arith.constant 0 : i32
    return %arg0, %c0_i32, %arg1 : i32, i32, i32
  }
  func.func @transform_1(%arg0: i32, %arg1: i32) -> (i32, i32) {
    %c0_i32 = arith.constant 0 : i32
    %c0_i32_0 = arith.constant 0 : i32
    %c0_i32_1 = arith.constant 0 : i32
    return %c0_i32, %c0_i32_0 : i32, i32
  }
  func.func @transform_2(%arg0: i32, %arg1: i32) -> (i32, i32) {
    %c0_i32 = arith.constant 0 : i32
    %c0_i32_0 = arith.constant 0 : i32
    %c0_i32_1 = arith.constant 0 : i32
    return %c0_i32, %c0_i32_0 : i32, i32
  }
  func.func @transform_3(%arg0: i32, %arg1: i32) -> (i32, i32) {
    %c0_i32 = arith.constant 0 : i32
    %c0_i32_0 = arith.constant 0 : i32
    %c0_i32_1 = arith.constant 0 : i32
    return %c0_i32, %c0_i32_0 : i32, i32
  }
  func.func @transform_4(%arg0: i32, %arg1: i32) -> (i32, i32) {
    %c0_i32 = arith.constant 0 : i32
    %c0_i32_0 = arith.constant 0 : i32
    %c0_i32_1 = arith.constant 0 : i32
    return %c0_i32, %c0_i32_0 : i32, i32
  }
  func.func @transform_5(%arg0: i32, %arg1: i32) -> (i32, i32, i32) {
    %c0_i32 = arith.constant 0 : i32
    %c0_i32_0 = arith.constant 0 : i32
    return %arg0, %c0_i32, %arg1 : i32, i32, i32
  }
}

</mosaic_0001>

<bundles_post_ra>
// kernel: feed_forward.1
= control target key start
LH: loop header
LB: loop body
LE: loop exit
PB: predicated region body
PF: predicated region fallthrough
CT: control target
= control target key end

     0   :  { %s759_s18 = smov 0   ;;  %s761_s19 = smov 0   ;;  %s828_s0 = inlined_call_operand.vmem [shape: f32[2,4,256], index: 0, kind: input, shape index: {}]   ;;  %s829_s1 = inlined_call_operand.vmem [shape: bf16[16,4], index: 1, kind: input, shape index: {}]   ;;  %s830_s2 = inlined_call_operand.vmem [shape: bf16[16,1], index: 2, kind: input, shape index: {}]   ;;  %s831_s3 = inlined_call_operand.vmem [shape: bf16[4,16], index: 3, kind: input, shape index: {}]   ;;  %s832_s4 = inlined_call_operand.vmem [shape: bf16[4,1], index: 4, kind: input, shape index: {}]   ;;  %s833_s5 = inlined_call_operand.vmem [shape: f32[2,4,256], index: 5, kind: output, shape index: {}]  }
   0x1   :  { %s763_s20 = smov 0  }
   0x2 LB: > { %s27_s21 = sadd.s32 1, %s720_s19  ;;  %p643_p0 = scmp.ge.s32.totalorder %s724_s20, 1  ;;  %s724_s20 = sphi %s763_s20, %s15_s20   ;;  %s720_s19 = sphi %s761_s19, %s835_s19   ;;  %s716_s18 = sphi %s759_s18, %s834_s18  }
   0x3   : > { %p29_p1 = scmp.ge.s32.totalorder %s27_s21, 2  ;;  %p208_p2 = scmp.lt.s32.totalorder %s724_s20, 3 }
   0x5   : > { %s837_s21 = smov (%p29_p1, %s27_s21), 0  ;;  %p209_p3 = pnand %p643_p0, %p208_p2 }
   0x6   : > { %p245_p4 = scmp.lt.s32.totalorder (!%p209_p3), %s716_s18, 1 }
   0x7   : > { %212 = sbr.rel (%p209_p3) target bundleno = 429 (0x1ad), region = 40 }
   0xc   : > { %v726_v0 = vmov 0   ;;  %v322_v1 = vld [vmem:[%s830_s2] sm:$0xf]  ;;  %s839_s18 = smov (!%p245_p4, %s716_s18), 1  ;;  %v323_v3 = vld [vmem:[%s830_s2 + $0x4] sm:$0xf] }
   0xd   : > { %688 = vset.pattern.permute.xlu0 %v726_v0  ;;  %689 = vset.pattern.permute.xlu1 %v726_v0  ;;  %s658_s24 = sshll.u32 %s839_s18, 3  ;;  %vm285_vm0 = vcmask 1041408   ;;  %v660_v10 = vld [vmem:[%s829_s1] sm:$0xff]  ;;  %vm281_vm1 = vcmask 31744   ;;  %v727_v11 = vmov 839922192  }
   0xe   : > { %326 = vperm.xlu0 %688, %v322_v1   ;;  %s252_s27 = scalar_lea.vmem %s828_s0, %s658_s24  ;;  %v330_v12 = vunpack.c.l.s4 %v727_v11  ;;  %vm445_vm2 = vcmask 130048   ;;  %vm548_vm3 = vcmask 1043456   ;;  %s262_s13 = scalar_lea.vmem %s833_s5, %s658_s24 }
   0xf   : > { %v265_v2 = vld [vmem:[%s252_s27] sm:$0xff] }
  0x10   : > { %267 = vst [vmem:[#allocation1] ss:$2 sm:$0xff] %v265_v2  ;;  %v331_v13 = vunpack.c.0.s8 %v330_v12 }
  0x16   : > { %335 = vperm.xlu0 %688, %v323_v3  }
  0x17   : > { %v268_v4 = vld.sshfl [vmem:[#allocation1] sm:$0xff pattern:$0x75316420]  ;;  %v269_v5 = vld.sshfl [vmem:[#allocation1 + $0x8] sm:$0xff pattern:$0x75316420] }
  0x18   : > { %v272_v6 = vpack.c.bf16 %v268_v4, %v268_v4  ;;  %v273_v7 = vpack.c.bf16 %v269_v5, %v269_v5 }
  0x1a   : > { %v287_v8 = vsel %vm285_vm0, %v272_v6, 0  ;;  %v290_v9 = vsel %vm285_vm0, %v273_v7, 0 }
  0x1b   : > { %299 = vmatpush.bf16.msra.mxu0 %v287_v8  ;;  %313 = vmatpush.bf16.msra.mxu1 %v290_v9 }
  0x1e   : > { %652 = vmatmul.msk.bf16.vlgmr.msra.gmra.mxu0 %vm281_vm1, %v660_v10  ;;  %653 = vmatmul.msk.bf16.vlgmr.msra.gmra.mxu1 %vm281_vm1, %v660_v10 }
  0x80   : > { %v327_v14 = vpop.permute.xlu0 %326 }
  0x81   : > { %v332_v15 = vperm.slane %v327_v14, %v331_v13 }
  0x83   : > { %v346_v18 = vunpack.c.l.bf16 %v332_v15 }
  0x88   : > { %v336_v20 = vpop.permute.xlu0 %335 }
  0x89   : > { %v341_v25 = vperm.slane %v336_v20, %v331_v13 }
  0x8b   : > { %v347_v32 = vunpack.c.l.bf16 %v341_v25 }
  0x9b   : > { %v301_v16 = vpop.f32.mrf.mxu0  ;;  %v315_v17 = vpop.f32.mrf.mxu1 }
  0x9c   : > { %v320_v19 = vpack.c.bf16 %v315_v17, %v301_v16 }
  0x9e   : > { %v342_v21 = vunpack.c.l.bf16 %v320_v19  ;;  %v343_v22 = vunpack.c.h.bf16 %v320_v19 }
  0xa0   : > { %v348_v23 = vadd.f32 %v346_v18, %v342_v21  ;;  %v349_v24 = vadd.f32 %v346_v18, %v343_v22  ;;  %v476_v21 = vld [vmem:[%s832_s4] sm:$0x3] }
  0xa1   : > { %479 = vperm.xlu1 %689, %v476_v21  }
  0xa2   : > { %v352_v26 = vpack.c.bf16 %v349_v24, %v348_v23 }
  0xa3   : > { %v303_v27 = vpop.f32.mrf.mxu0  ;;  %v317_v28 = vpop.f32.mrf.mxu1 }
  0xa4   : > { %v794_v29 = vunpack.c.l.bf16 %v352_v26  ;;  %v796_v30 = vunpack.c.h.bf16 %v352_v26  ;;  %v321_v31 = vpack.c.bf16 %v317_v28, %v303_v27 }
  0xa6   : > { %v364_v33 = vmul.f32 0.044677734, %v794_v29  ;;  %v365_v34 = vmul.f32 0.044677734, %v796_v30  ;;  %v344_v35 = vunpack.c.l.bf16 %v321_v31  ;;  %v345_v36 = vunpack.c.h.bf16 %v321_v31 }
  0xa8   : > { %v368_v37 = vpack.c.bf16 %v365_v34, %v364_v33  ;;  %v350_v38 = vadd.f32 %v347_v32, %v344_v35  ;;  %v351_v39 = vadd.f32 %v347_v32, %v345_v36 }
  0xaa   : > { %v370_v40 = vunpack.c.l.bf16 %v368_v37  ;;  %v371_v41 = vunpack.c.h.bf16 %v368_v37  ;;  %v353_v42 = vpack.c.bf16 %v351_v39, %v350_v38  ;;  %v358_v38 = vmul.f32 0.5, %v794_v29 }
  0xab   : > { %v359_v39 = vmul.f32 0.5, %v796_v30 }
  0xac   : > { %v374_v43 = vmul.f32 %v370_v40, %v794_v29  ;;  %v375_v44 = vmul.f32 %v371_v41, %v796_v30  ;;  %v356_v45 = vunpack.c.l.bf16 %v353_v42  ;;  %v357_v46 = vunpack.c.h.bf16 %v353_v42 }
  0xae   : > { %v378_v47 = vpack.c.bf16 %v375_v44, %v374_v43  ;;  %v366_v48 = vmul.f32 0.044677734, %v356_v45  ;;  %v367_v49 = vmul.f32 0.044677734, %v357_v46  ;;  %v360_v40 = vmul.f32 0.5, %v356_v45 }
  0xaf   : > { %v361_v41 = vmul.f32 0.5, %v357_v46 }
  0xb0   : > { %v380_v50 = vunpack.c.l.bf16 %v378_v47  ;;  %v381_v51 = vunpack.c.h.bf16 %v378_v47  ;;  %v369_v52 = vpack.c.bf16 %v367_v49, %v366_v48  ;;  %v362_v48 = vpack.c.bf16 %v359_v39, %v358_v38 }
  0xb1   : > { %v363_v49 = vpack.c.bf16 %v361_v41, %v360_v40 }
  0xb2   : > { %v384_v53 = vmul.f32 %v380_v50, %v794_v29  ;;  %v385_v54 = vmul.f32 %v381_v51, %v796_v30  ;;  %v372_v55 = vunpack.c.l.bf16 %v369_v52  ;;  %v373_v56 = vunpack.c.h.bf16 %v369_v52 }
  0xb4   : > { %v388_v57 = vpack.c.bf16 %v385_v54, %v384_v53  ;;  %v376_v58 = vmul.f32 %v372_v55, %v356_v45  ;;  %v377_v59 = vmul.f32 %v373_v56, %v357_v46  ;;  %v430_v55 = vunpack.c.l.bf16 %v362_v48 }
  0xb5   : > { %v431_v56 = vunpack.c.h.bf16 %v362_v48 }
  0xb6   : > { %v390_v60 = vunpack.c.l.bf16 %v388_v57  ;;  %v391_v61 = vunpack.c.h.bf16 %v388_v57  ;;  %v379_v62 = vpack.c.bf16 %v377_v59, %v376_v58  ;;  %v432_v57 = vunpack.c.l.bf16 %v363_v49 }
  0xb8   : > { %v394_v63 = vadd.f32 %v390_v60, %v794_v29  ;;  %v395_v0 = vadd.f32 %v391_v61, %v796_v30  ;;  %v382_v1 = vunpack.c.l.bf16 %v379_v62  ;;  %v383_v2 = vunpack.c.h.bf16 %v379_v62 }
  0xb9   : > { %v433_v29 = vunpack.c.h.bf16 %v363_v49 }
  0xba   : > { %v398_v3 = vpack.c.bf16 %v395_v0, %v394_v63  ;;  %v386_v4 = vmul.f32 %v382_v1, %v356_v45  ;;  %v387_v5 = vmul.f32 %v383_v2, %v357_v46  ;;  %v444_v63 = vld [vmem:[%s831_s3] sm:$0x3]  ;;  %v728_v0 = vmov 269488144  }
  0xbb   : > { %v483_v1 = vunpack.c.l.s4 %v728_v0 }
  0xbc   : > { %v389_v6 = vpack.c.bf16 %v387_v5, %v386_v4  ;;  %v400_v7 = vunpack.c.l.bf16 %v398_v3  ;;  %v401_v8 = vunpack.c.h.bf16 %v398_v3 }
  0xbd   : > { %v484_v2 = vunpack.c.0.s8 %v483_v1 }
  0xbe   : > { %v392_v9 = vunpack.c.l.bf16 %v389_v6  ;;  %v393_v10 = vunpack.c.h.bf16 %v389_v6  ;;  %v404_v11 = vmul.f32 0.796875, %v400_v7  ;;  %v405_v12 = vmul.f32 0.796875, %v401_v8 }
  0xc0   : > { %v396_v13 = vadd.f32 %v392_v9, %v356_v45  ;;  %v397_v14 = vadd.f32 %v393_v10, %v357_v46  ;;  %v408_v15 = vpack.c.bf16 %v405_v12, %v404_v11 }
  0xc2   : > { %v399_v16 = vpack.c.bf16 %v397_v14, %v396_v13  ;;  %v410_v17 = vunpack.c.l.bf16 %v408_v15  ;;  %v411_v18 = vunpack.c.h.bf16 %v408_v15 }
  0xc4   : > { %v402_v19 = vunpack.c.l.bf16 %v399_v16  ;;  %v403_v20 = vunpack.c.h.bf16 %v399_v16  ;;  %690 = vtanh.f32 %v410_v17 }
  0xc5   : > { %692 = vtanh.f32 %v411_v18 }
  0xc6   : > { %v406_v22 = vmul.f32 0.796875, %v402_v19  ;;  %v407_v23 = vmul.f32 0.796875, %v403_v20 }
  0xc8   : > { %v409_v24 = vpack.c.bf16 %v407_v23, %v406_v22 }
  0xca   : > { %v691_v25 = vpop.eup %690  ;;  %v412_v26 = vunpack.c.l.bf16 %v409_v24  ;;  %v413_v27 = vunpack.c.h.bf16 %v409_v24 }
  0xcb   : > { %v693_v28 = vpop.eup %692 }
  0xcc   : > { %694 = vtanh.f32 %v412_v26  ;;  %v418_v31 = vpack.c.bf16 %v693_v28, %v691_v25 }
  0xcd   : > { %696 = vtanh.f32 %v413_v27 }
  0xce   : > { %v420_v32 = vunpack.c.l.bf16 %v418_v31  ;;  %v421_v33 = vunpack.c.h.bf16 %v418_v31 }
  0xd0   : > { %v424_v35 = vadd.f32 1.0, %v420_v32  ;;  %v425_v36 = vadd.f32 1.0, %v421_v33 }
  0xd2   : > { %v695_v34 = vpop.eup %694  ;;  %v428_v47 = vpack.c.bf16 %v425_v36, %v424_v35 }
  0xd3   : > { %v697_v37 = vpop.eup %696 }
  0xd4   : > { %v419_v42 = vpack.c.bf16 %v697_v37, %v695_v34  ;;  %v434_v53 = vunpack.c.l.bf16 %v428_v47  ;;  %v435_v54 = vunpack.c.h.bf16 %v428_v47 }
  0xd6   : > { %v422_v43 = vunpack.c.l.bf16 %v419_v42  ;;  %v423_v44 = vunpack.c.h.bf16 %v419_v42  ;;  %v438_v30 = vmul.f32 %v434_v53, %v430_v55  ;;  %v439_v46 = vmul.f32 %v435_v54, %v431_v56 }
  0xd8   : > { %v426_v50 = vadd.f32 1.0, %v422_v43  ;;  %v427_v51 = vadd.f32 1.0, %v423_v44 }
  0xda   : > { %v429_v52 = vpack.c.bf16 %v427_v51, %v426_v50 }
  0xdc   : > { %v436_v58 = vunpack.c.l.bf16 %v429_v52  ;;  %v437_v59 = vunpack.c.h.bf16 %v429_v52 }
  0xde   : > { %v440_v45 = vmul.f32 %v436_v58, %v432_v57  ;;  %v441_v60 = vmul.f32 %v437_v59, %v433_v29 }
  0xe0   : > { %v442_v61 = vpack.c.bf16 %v440_v45, %v438_v30  ;;  %v443_v62 = vpack.c.bf16 %v441_v60, %v439_v46 }
  0xe2   : > { %456 = vmatpush.bf16.msra.mxu2 %v442_v61  ;;  %469 = vmatpush.bf16.msra.mxu3 %v443_v62 }
  0xe5   : > { %654 = vmatmul.msk.bf16.vlgmr.msra.gmra.mxu2 %vm445_vm2, %v444_v63  ;;  %655 = vmatmul.msk.bf16.vlgmr.msra.gmra.mxu3 %vm445_vm2, %v444_v63 }
 0x113   : > { %v480_v3 = vpop.permute.xlu1 %479 }
 0x114   : > { %v485_v4 = vperm.slane %v480_v3, %v484_v2 }
 0x116   : > { %v488_v5 = vunpack.c.l.bf16 %v485_v4 }
 0x118   : > { %490 = vst [vmem:[#allocation1] ss:$2 sm:$0xff] %v488_v5 }
 0x11f   : > { %v491_v9 = vld.sshfl [vmem:[#allocation1] sm:$0xff pattern:$0x75316420]  ;;  %v492_v10 = vld.sshfl [vmem:[#allocation1 + $0x8] sm:$0xff pattern:$0x75316420] }
 0x168   : > { %v458_v6 = vpop.f32.mrf.mxu2  ;;  %v471_v7 = vpop.f32.mrf.mxu3 }
 0x169   : > { %v475_v8 = vpack.c.bf16 %v471_v7, %v458_v6 }
 0x16b   : > { %v486_v11 = vunpack.c.l.bf16 %v475_v8  ;;  %v487_v12 = vunpack.c.h.bf16 %v475_v8 }
 0x16d   : > { %v495_v13 = vadd.f32 %v491_v9, %v486_v11  ;;  %v496_v14 = vadd.f32 %v492_v10, %v487_v12 }
 0x16f   : > { %v497_v15 = vpack.c.bf16 %v496_v14, %v495_v13 }
 0x170   : > { %v460_v16 = vpop.f32.mrf.mxu2  ;;  %v473_v17 = vpop.f32.mrf.mxu3 }
 0x171   : > { %v498_v18 = vunpack.c.l.bf16 %v497_v15  ;;  %v499_v19 = vunpack.c.h.bf16 %v497_v15 }
 0x173   : > { %v503_v20 = vmul.f32 0.044677734, %v498_v18  ;;  %v504_v21 = vmul.f32 0.044677734, %v499_v19  ;;  %v500_v51 = vmul.f32 0.5, %v498_v18  ;;  %v501_v52 = vmul.f32 0.5, %v499_v19 }
 0x175   : > { %v505_v22 = vpack.c.bf16 %v504_v21, %v503_v20  ;;  %v502_v56 = vpack.c.bf16 %v501_v52, %v500_v51 }
 0x177   : > { %v506_v23 = vunpack.c.l.bf16 %v505_v22  ;;  %v507_v24 = vunpack.c.h.bf16 %v505_v22  ;;  %v536_v59 = vunpack.c.l.bf16 %v502_v56  ;;  %v537_v30 = vunpack.c.h.bf16 %v502_v56 }
 0x179   : > { %v508_v25 = vmul.f32 %v506_v23, %v498_v18  ;;  %v509_v26 = vmul.f32 %v507_v24, %v499_v19 }
 0x17b   : > { %v510_v27 = vpack.c.bf16 %v509_v26, %v508_v25 }
 0x17d   : > { %v511_v28 = vunpack.c.l.bf16 %v510_v27  ;;  %v512_v31 = vunpack.c.h.bf16 %v510_v27 }
 0x17f   : > { %v513_v32 = vmul.f32 %v511_v28, %v498_v18  ;;  %v514_v33 = vmul.f32 %v512_v31, %v499_v19 }
 0x181   : > { %v515_v34 = vpack.c.bf16 %v514_v33, %v513_v32 }
 0x183   : > { %v516_v35 = vunpack.c.l.bf16 %v515_v34  ;;  %v517_v36 = vunpack.c.h.bf16 %v515_v34 }
 0x185   : > { %v518_v37 = vadd.f32 %v516_v35, %v498_v18  ;;  %v519_v38 = vadd.f32 %v517_v36, %v499_v19 }
 0x187   : > { %v520_v39 = vpack.c.bf16 %v519_v38, %v518_v37 }
 0x189   : > { %v521_v40 = vunpack.c.l.bf16 %v520_v39  ;;  %v522_v41 = vunpack.c.h.bf16 %v520_v39 }
 0x18b   : > { %v523_v42 = vmul.f32 0.796875, %v521_v40  ;;  %v524_v43 = vmul.f32 0.796875, %v522_v41 }
 0x18d   : > { %v525_v44 = vpack.c.bf16 %v524_v43, %v523_v42 }
 0x18f   : > { %v526_v47 = vunpack.c.l.bf16 %v525_v44  ;;  %v527_v48 = vunpack.c.h.bf16 %v525_v44 }
 0x191   : > { %698 = vtanh.f32 %v526_v47 }
 0x192   : > { %700 = vtanh.f32 %v527_v48 }
 0x197   : > { %v699_v49 = vpop.eup %698 }
 0x198   : > { %v701_v50 = vpop.eup %700 }
 0x199   : > { %v530_v53 = vpack.c.bf16 %v701_v50, %v699_v49 }
 0x19b   : > { %v531_v54 = vunpack.c.l.bf16 %v530_v53  ;;  %v532_v55 = vunpack.c.h.bf16 %v530_v53 }
 0x19d   : > { %v533_v57 = vadd.f32 1.0, %v531_v54  ;;  %v534_v58 = vadd.f32 1.0, %v532_v55 }
 0x19f   : > { %v535_v29 = vpack.c.bf16 %v534_v58, %v533_v57 }
 0x1a1   : > { %v538_v45 = vunpack.c.l.bf16 %v535_v29  ;;  %v539_v46 = vunpack.c.h.bf16 %v535_v29 }
 0x1a3   : > { %v540_v60 = vmul.f32 %v538_v45, %v536_v59  ;;  %v541_v61 = vmul.f32 %v539_v46, %v537_v30 }
 0x1a5   : > { %v542_v62 = vpack.c.bf16 %v541_v61, %v540_v60 }
 0x1a7   : > { %v544_v63 = vunpack.c.h.bf16 %v542_v62  ;;  %v543_v0 = vunpack.c.l.bf16 %v542_v62 }
 0x1a9   : > { %v547_v1 = vrot.slane %v544_v63, 4 }
 0x1ab   : > { %v549_v2 = vsel %vm548_vm3, %v543_v0, %v547_v1 }
 0x1ac   : > { %551 = vst [vmem:[%s262_s13] sm:$0xff] %v549_v2 }
 0x1ad PF: > { %s15_s20 = sadd.s32 1, %s724_s20   ;;  %s834_s18 = smov %s720_s19 }
 0x1ae   : > { %p12_p5 = scmp.ge.s32.totalorder %s15_s20, 4   ;;  %s835_s19 = smov %s837_s21 }
 0x1b0   :  { %14 = sbr.rel (!%p12_p5) target bundleno = 2 (0x2), region = 70 }

</bundles_post_ra>
